<compile_context>
chip_gen: v5e
topology: v5e:2x2
jax: 0.10.0
libtpu: 0.0.40
codegen_flags: <defaults>
</compile_context>

<pallas_src>
import numpy as np
import jax
import jax.numpy as jnp
from jax.experimental import pallas as pl
from jax.experimental.pallas import tpu as pltpu

LANE = 128


def _round_up(n, m):
    return ((n + m - 1) // m) * m


# ----------------------------------------------------------------------------
# Mask construction (verbatim numpy port of the PyTorch module's helpers).
# ----------------------------------------------------------------------------
def sample_mask_indices(D, H, simple=False):
    if simple:
        return np.random.randint(0, D, size=(H,))
    else:
        mk = np.linspace(0, D - 1, H)
        ints = np.array(mk, dtype=int)
        ints += np.random.rand() < mk - ints
        return ints


def create_mask(D_observed, D_latent, H, num_layers):
    m_input = np.concatenate((np.zeros(D_observed), 1 + np.arange(D_latent)))
    m_w = [sample_mask_indices(D_latent, H) for _ in range(num_layers)]
    m_v = np.arange(D_latent)
    M_A = 1.0 * (np.atleast_2d(m_v).T >= np.atleast_2d(m_input))
    M_W = [1.0 * (np.atleast_2d(m_w[0]).T >= np.atleast_2d(m_input))]
    for i in range(1, num_layers):
        M_W.append(1.0 * (np.atleast_2d(m_w[i]).T >= np.atleast_2d(m_w[i - 1])))
    M_V = 1.0 * (np.atleast_2d(m_v).T >= np.atleast_2d(m_w[-1]))
    return (M_W, M_V, M_A)


# ----------------------------------------------------------------------------
# Pallas kernel: masked-MLP forward (masks pre-folded, all dims lane-padded),
# fused [h | x] @ [V; A] output layer, one batch tile per grid step.
# ----------------------------------------------------------------------------
def make_made_kernel(num_layers):
    def kernel(*refs):
        # refs = x, (Wm_l, b_l) * num_layers, VA, b_out, out
        x_ref = refs[0]
        out_ref = refs[-1]
        x = x_ref[...]                       # [tile_b, D_in_pad]  (f32)

        h = x
        idx = 1
        for _ in range(num_layers):
            w = refs[idx][...]               # pre-masked, padded [in_pad, H_pad]
            b = refs[idx + 1][...]           # [1, H_pad] (padded entries = 0)
            idx += 2
            z = jnp.dot(h, w, preferred_element_type=jnp.float32)
            h = jnp.maximum(z + b, 0.0)      # padded lanes stay exactly 0

        va = refs[idx][...]                  # stacked [H_pad + D_in_pad, D_out_pad]
        b_out = refs[idx + 1][...]           # [1, D_out_pad]

        hx = jnp.concatenate([h, x], axis=-1)        # lane-aligned 128+128 concat
        acc = jnp.dot(hx, va, preferred_element_type=jnp.float32)
        out_ref[...] = (acc + b_out).astype(out_ref.dtype)

    return kernel


# ----------------------------------------------------------------------------
# One-time parameter preparation: fold masks into weights, pad every dim to a
# lane-dense multiple of 128, and stack [V; A] for the fused skip connection.
# Call once and reuse across forward calls.
# ----------------------------------------------------------------------------
def prepare_made_params(params, masks, compute_dtype=jnp.float32):
    num_layers = len(params["W"])
    D_in, H = params["W"][0].shape
    D_latent = params["V"].shape[1]
    D_in_pad = _round_up(D_in, LANE)
    H_pad = _round_up(H, LANE)
    D_out_pad = _round_up(D_latent, LANE)

    Wm, bs = [], []
    for l in range(num_layers):
        in_dim = D_in if l == 0 else H
        in_pad = D_in_pad if l == 0 else H_pad
        w = (params["W"][l] * masks["M_W"][l]).astype(compute_dtype)
        w = jnp.pad(w, ((0, in_pad - in_dim), (0, H_pad - H)))
        b = jnp.pad(params["b"][l].astype(compute_dtype),
                    ((0, 0), (0, H_pad - H)))          # padded biases are zero
        Wm.append(w)
        bs.append(b)

    V = jnp.pad((params["V"] * masks["M_V"]).astype(compute_dtype),
                ((0, H_pad - H), (0, D_out_pad - D_latent)))
    A = jnp.pad((params["A"] * masks["M_A"]).astype(compute_dtype),
                ((0, D_in_pad - D_in), (0, D_out_pad - D_latent)))
    VA = jnp.concatenate([V, A], axis=0)               # [H_pad + D_in_pad, D_out_pad]
    b_out = jnp.pad(params["b_v"].astype(compute_dtype),
                    ((0, 0), (0, D_out_pad - D_latent)))

    return dict(num_layers=num_layers, compute_dtype=compute_dtype,
                D_in=D_in, D_in_pad=D_in_pad, H_pad=H_pad,
                D_latent=D_latent, D_out_pad=D_out_pad,
                Wm=Wm, bs=bs, VA=VA, b_out=b_out)


def _default_num_tiles():
    # 2 TensorCores on v7x -> 2 parallel batch tiles; single TC elsewhere -> 1
    # big tile (grid is a serial loop there, fewer steps = less fixed overhead).
    try:
        kind = jax.devices()[0].device_kind.lower()
        if "v7" in kind:
            return 2
    except Exception:
        pass
    return 1


def made_forward(x, prepped, *, num_tiles=None):
    """x: [B, D_in]. prepped: output of prepare_made_params()."""
    B, D_in = x.shape
    assert D_in == prepped["D_in"]
    cdt = prepped["compute_dtype"]
    num_layers = prepped["num_layers"]
    D_in_pad, H_pad = prepped["D_in_pad"], prepped["H_pad"]
    D_out_pad, D_latent = prepped["D_out_pad"], prepped["D_latent"]

    if num_tiles is None:
        num_tiles = _default_num_tiles()
    tile_b = _round_up(-(-B // num_tiles), 8)
    B_pad = tile_b * num_tiles

    x_p = jnp.pad(x.astype(cdt), ((0, B_pad - B), (0, D_in_pad - D_in)))

    # x / out are batch-tiled (pipelined); weights are resident whole-array
    # VMEM inputs (grid-invariant, single-buffered).
    resident = pl.BlockSpec(memory_space=pltpu.MemorySpace.VMEM)
    in_specs = [pl.BlockSpec((tile_b, D_in_pad), lambda i: (i, 0))]
    args = [x_p]
    for l in range(num_layers):
        in_specs += [resident, resident]
        args += [prepped["Wm"][l], prepped["bs"][l]]
    in_specs += [resident, resident]
    args += [prepped["VA"], prepped["b_out"]]

    # Real VMEM budget (x2 slack), capped at 32 MiB (v7x has 64 MiB physical).
    itemsize = jnp.dtype(cdt).itemsize
    weight_bytes = sum(int(a.size) * a.dtype.itemsize for a in args[1:])
    io_bytes = 2 * tile_b * D_in_pad * itemsize + 2 * tile_b * D_out_pad * 4
    act_bytes = 4 * tile_b * (H_pad + D_in_pad) * 4
    vmem_limit = int(min(max(2 * (weight_bytes + io_bytes + act_bytes), 4 << 20),
                         32 << 20))

    out = pl.pallas_call(
        make_made_kernel(num_layers),
        out_shape=jax.ShapeDtypeStruct((B_pad, D_out_pad), jnp.float32),
        grid_spec=pltpu.PrefetchScalarGridSpec(
            num_scalar_prefetch=0,
            grid=(num_tiles,),
            in_specs=in_specs,
            out_specs=pl.BlockSpec((tile_b, D_out_pad), lambda i: (i, 0)),
        ),
        compiler_params=pltpu.CompilerParams(
            dimension_semantics=("parallel",),
            vmem_limit_bytes=vmem_limit,
        ),
    )(*args)
    # Downstream consumers could keep the lane-padded [B_pad, D_out_pad] slab;
    # we slice here only for the exact-shape correctness check.
    return out[:B, :D_latent]


# Pure-JAX reference (unfolded masks, f32) for the correctness check.
def made_forward_ref(x, params, masks):
    h = x
    for l in range(len(params["W"])):
        h = jnp.maximum(h @ (params["W"][l] * masks["M_W"][l]) + params["b"][l], 0.0)
    return (h @ (params["V"] * masks["M_V"])
            + x @ (params["A"] * masks["M_A"])
            + params["b_v"])


if __name__ == "__main__":
    # Deterministic config / mask construction (module-sized dims).
    np.random.seed(0)
    D_observed, D_latent, H, num_layers = 6, 10, 32, 2
    D_in = D_observed + D_latent
    B = 256

    M_W_np, M_V_np, M_A_np = create_mask(D_observed, D_latent, H, num_layers)
    # Pre-transpose masks to [in, out] to match the weight layout used in-kernel.
    masks = {
        "M_W": [jnp.asarray(M.T, dtype=jnp.float32) for M in M_W_np],  # [in, H]
        "M_V": jnp.asarray(M_V_np.T, dtype=jnp.float32),               # [H, D_latent]
        "M_A": jnp.asarray(M_A_np.T, dtype=jnp.float32),               # [D_in, D_latent]
    }

    # Deterministic parameter init (synthetic weights, shapes from __init__).
    key = jax.random.PRNGKey(0)
    ks = jax.random.split(key, 2 * num_layers + 4)
    params = {"W": [], "b": []}
    for l in range(num_layers):
        in_dim = D_in if l == 0 else H
        params["W"].append(0.1 * jax.random.normal(ks[2 * l], (in_dim, H), jnp.float32))
        params["b"].append(0.1 * jax.random.normal(ks[2 * l + 1], (1, H), jnp.float32))
    params["V"] = 0.1 * jax.random.normal(ks[-4], (H, D_latent), jnp.float32)
    params["b_v"] = 0.1 * jax.random.normal(ks[-3], (1, D_latent), jnp.float32)
    params["A"] = 0.1 * jax.random.normal(ks[-2], (D_in, D_latent), jnp.float32)

    x = jax.random.normal(ks[-1], (B, D_in), jnp.float32)

    # One-time prep (mask fold + lane padding + stacked skip weight), reused
    # across calls; f32 compute so the 1e-5 reference check holds.
    prepped = prepare_made_params(params, masks, compute_dtype=jnp.float32)

    out = made_forward(x, prepped)
    out = jax.block_until_ready(out)

    ref = made_forward_ref(x, params, masks)
    assert out.shape == (B, D_latent)
    np.testing.assert_allclose(np.asarray(out), np.asarray(ref), rtol=1e-5, atol=1e-5)

    print("KERNEL_OK")
</pallas_src>

<mosaic_0001>
module attributes {stable_mosaic.version = 11 : i64} {
  func.func @kernel(%arg0: i32, %arg1: memref<256x128xf32, #tpu.memory_space<vmem>>, %arg2: memref<128x128xf32, #tpu.memory_space<vmem>>, %arg3: memref<1x128xf32, #tpu.memory_space<vmem>>, %arg4: memref<128x128xf32, #tpu.memory_space<vmem>>, %arg5: memref<1x128xf32, #tpu.memory_space<vmem>>, %arg6: memref<256x128xf32, #tpu.memory_space<vmem>>, %arg7: memref<1x128xf32, #tpu.memory_space<vmem>>, %arg8: memref<256x128xf32, #tpu.memory_space<vmem>>) attributes {dimension_semantics = [#tpu.dimension_semantics<parallel>], iteration_bounds = array<i64: 1>, scalar_prefetch = 0 : i64, scratch_operands = 0 : i64, tpu.core_type = #tpu.core_type<tc>, window_params = [{transform_indices = @transform_0, window_bounds = array<i64: 256, 128>}, {pipeline_mode = #tpu.pipeline_mode<synchronous>, transform_indices = @transform_1, window_bounds = array<i64: 128, 128>}, {pipeline_mode = #tpu.pipeline_mode<synchronous>, transform_indices = @transform_2, window_bounds = array<i64: 1, 128>}, {pipeline_mode = #tpu.pipeline_mode<synchronous>, transform_indices = @transform_3, window_bounds = array<i64: 128, 128>}, {pipeline_mode = #tpu.pipeline_mode<synchronous>, transform_indices = @transform_4, window_bounds = array<i64: 1, 128>}, {pipeline_mode = #tpu.pipeline_mode<synchronous>, transform_indices = @transform_5, window_bounds = array<i64: 256, 128>}, {pipeline_mode = #tpu.pipeline_mode<synchronous>, transform_indices = @transform_6, window_bounds = array<i64: 1, 128>}, {transform_indices = @transform_7, window_bounds = array<i64: 256, 128>}]} {
    %c0 = arith.constant 0 : index
    %c0_0 = arith.constant 0 : index
    %0 = vector.load %arg1[%c0, %c0_0] : memref<256x128xf32, #tpu.memory_space<vmem>>, vector<256x128xf32>
    %c0_1 = arith.constant 0 : index
    %c0_2 = arith.constant 0 : index
    %1 = vector.load %arg2[%c0_1, %c0_2] : memref<128x128xf32, #tpu.memory_space<vmem>>, vector<128x128xf32>
    %c0_3 = arith.constant 0 : index
    %c0_4 = arith.constant 0 : index
    %2 = vector.load %arg3[%c0_3, %c0_4] : memref<1x128xf32, #tpu.memory_space<vmem>>, vector<1x128xf32>
    %cst = arith.constant dense<0.000000e+00> : vector<256x128xf32>
    %3 = tpu.matmul %0, %1, %cst {dimension_numbers = #tpu.dot_dimension_numbers<[1], [0], [0], [1], [0, 0, 1, 1], [], []>} : vector<256x128xf32>, vector<128x128xf32>, vector<256x128xf32> -> vector<256x128xf32>
    %4 = vector.broadcast %2 : vector<1x128xf32> to vector<256x128xf32>
    %5 = arith.addf %3, %4 : vector<256x128xf32>
    %cst_5 = arith.constant 0.000000e+00 : f32
    %6 = vector.broadcast %cst_5 : f32 to vector<256x128xf32>
    %7 = arith.maximumf %5, %6 : vector<256x128xf32>
    %c0_6 = arith.constant 0 : index
    %c0_7 = arith.constant 0 : index
    %8 = vector.load %arg4[%c0_6, %c0_7] : memref<128x128xf32, #tpu.memory_space<vmem>>, vector<128x128xf32>
    %c0_8 = arith.constant 0 : index
    %c0_9 = arith.constant 0 : index
    %9 = vector.load %arg5[%c0_8, %c0_9] : memref<1x128xf32, #tpu.memory_space<vmem>>, vector<1x128xf32>
    %cst_10 = arith.constant dense<0.000000e+00> : vector<256x128xf32>
    %10 = tpu.matmul %7, %8, %cst_10 {dimension_numbers = #tpu.dot_dimension_numbers<[1], [0], [0], [1], [0, 0, 1, 1], [], []>} : vector<256x128xf32>, vector<128x128xf32>, vector<256x128xf32> -> vector<256x128xf32>
    %11 = vector.broadcast %9 : vector<1x128xf32> to vector<256x128xf32>
    %12 = arith.addf %10, %11 : vector<256x128xf32>
    %cst_11 = arith.constant 0.000000e+00 : f32
    %13 = vector.broadcast %cst_11 : f32 to vector<256x128xf32>
    %14 = arith.maximumf %12, %13 : vector<256x128xf32>
    %c0_12 = arith.constant 0 : index
    %c0_13 = arith.constant 0 : index
    %15 = vector.load %arg6[%c0_12, %c0_13] : memref<256x128xf32, #tpu.memory_space<vmem>>, vector<256x128xf32>
    %c0_14 = arith.constant 0 : index
    %c0_15 = arith.constant 0 : index
    %16 = vector.load %arg7[%c0_14, %c0_15] : memref<1x128xf32, #tpu.memory_space<vmem>>, vector<1x128xf32>
    %17 = tpu.concatenate %14, %0 in 1 : vector<256x128xf32>, vector<256x128xf32> -> vector<256x256xf32>
    %cst_16 = arith.constant dense<0.000000e+00> : vector<256x128xf32>
    %18 = tpu.matmul %17, %15, %cst_16 {dimension_numbers = #tpu.dot_dimension_numbers<[1], [0], [0], [1], [0, 0, 1, 1], [], []>} : vector<256x256xf32>, vector<256x128xf32>, vector<256x128xf32> -> vector<256x128xf32>
    %19 = vector.broadcast %16 : vector<1x128xf32> to vector<256x128xf32>
    %20 = arith.addf %18, %19 : vector<256x128xf32>
    %c0_17 = arith.constant 0 : index
    %c0_18 = arith.constant 0 : index
    %21 = vector.load %arg8[%c0_17, %c0_18] : memref<256x128xf32, #tpu.memory_space<vmem>>, vector<256x128xf32>
    tpu.vector_store %arg8[%c0_17, %c0_18], %20 {strides = array<i32>} : memref<256x128xf32, #tpu.memory_space<vmem>>, vector<256x128xf32>,
    return
  }
  func.func @transform_0(%arg0: i32) -> (i32, i32) {
    %c0_i32 = arith.constant 0 : i32
    %c0_i32_0 = arith.constant 0 : i32
    return %arg0, %c0_i32 : i32, i32
  }
  func.func @transform_1(%arg0: i32) -> (i32, i32) {
    %c0_i32 = arith.constant 0 : i32
    %c0_i32_0 = arith.constant 0 : i32
    %c0_i32_1 = arith.constant 0 : i32
    return %c0_i32, %c0_i32_0 : i32, i32
  }
  func.func @transform_2(%arg0: i32) -> (i32, i32) {
    %c0_i32 = arith.constant 0 : i32
    %c0_i32_0 = arith.constant 0 : i32
    %c0_i32_1 = arith.constant 0 : i32
    return %c0_i32, %c0_i32_0 : i32, i32
  }
  func.func @transform_3(%arg0: i32) -> (i32, i32) {
    %c0_i32 = arith.constant 0 : i32
    %c0_i32_0 = arith.constant 0 : i32
    %c0_i32_1 = arith.constant 0 : i32
    return %c0_i32, %c0_i32_0 : i32, i32
  }
  func.func @transform_4(%arg0: i32) -> (i32, i32) {
    %c0_i32 = arith.constant 0 : i32
    %c0_i32_0 = arith.constant 0 : i32
    %c0_i32_1 = arith.constant 0 : i32
    return %c0_i32, %c0_i32_0 : i32, i32
  }
  func.func @transform_5(%arg0: i32) -> (i32, i32) {
    %c0_i32 = arith.constant 0 : i32
    %c0_i32_0 = arith.constant 0 : i32
    %c0_i32_1 = arith.constant 0 : i32
    return %c0_i32, %c0_i32_0 : i32, i32
  }
  func.func @transform_6(%arg0: i32) -> (i32, i32) {
    %c0_i32 = arith.constant 0 : i32
    %c0_i32_0 = arith.constant 0 : i32
    %c0_i32_1 = arith.constant 0 : i32
    return %c0_i32, %c0_i32_0 : i32, i32
  }
  func.func @transform_7(%arg0: i32) -> (i32, i32) {
    %c0_i32 = arith.constant 0 : i32
    %c0_i32_0 = arith.constant 0 : i32
    return %arg0, %c0_i32 : i32, i32
  }
}

</mosaic_0001>

<bundles_post_ra>
// kernel: tpu_custom_call.1
= control target key start
LH: loop header
LB: loop body
LE: loop exit
PB: predicated region body
PF: predicated region fallthrough
CT: control target
= control target key end

     0   :  { %12 = vsyncpa [#allocation3], 0  ;;  %s1221_s0 = inlined_call_operand.hbm [shape: f32[256,128], index: 0, kind: input, shape index: {}]   ;;  %s1222_s1 = inlined_call_operand.hbm [shape: f32[128,128], index: 1, kind: input, shape index: {}]   ;;  %s1223_s2 = inlined_call_operand.vmem [shape: f32[1,128], index: 2, kind: input, shape index: {}]   ;;  %s1224_s3 = inlined_call_operand.hbm [shape: f32[128,128], index: 3, kind: input, shape index: {}]   ;;  %s1225_s4 = inlined_call_operand.vmem [shape: f32[1,128], index: 4, kind: input, shape index: {}]   ;;  %s1226_s5 = inlined_call_operand.hbm [shape: f32[256,128], index: 5, kind: input, shape index: {}]   ;;  %s1227_s6 = inlined_call_operand.vmem [shape: f32[1,128], index: 6, kind: input, shape index: {}]   ;;  %s1228_s7 = inlined_call_operand.hbm [shape: f32[256,128], index: 7, kind: output, shape index: {}]  }
   0x1   :  { %13 = vsyncpa [#allocation6], 0 }
   0x2   :  { %14 = vsyncpa [#allocation9], 0 }
   0x3   :  { %15 = vsyncpa [#allocation4], 0  ;;  %s33_s26 = sshll.u32 %s1222_s1, 4  ;;  %s905_s27 = smov [#allocation5]   ;;  %s34_s26 = int_to_ptr.hbm [resolvable:$true] %s33_s26 }
   0x4   :  { %s35_s28 = sshll.u32 %s905_s27, 4  ;;  %s20_s8 = sshll.u32 %s1221_s0, 4  ;;  %s36_s28 = int_to_ptr.vmem [resolvable:$true] %s35_s28  ;;  %s21_s8 = int_to_ptr.hbm [resolvable:$true] %s20_s8 }
   0x5   :  { %s906_s9 = smov 128   ;;  %s907_s10 = smov 8  }
   0x6   :  { %41 = dma.hbm_to_vmem [thread:$0]  %s34_s26, 2048, %s36_s28, [#allocation6], %s906_s9, %s906_s9, %s907_s10  }
   0x7   :  { %s908_s11 = smov [#allocation2]   ;;  %s48_s1 = sshll.u32 %s1224_s3, 4  ;;  %s49_s1 = int_to_ptr.hbm [resolvable:$true] %s48_s1 }
   0x8   :  { %s22_s12 = sshll.u32 %s908_s11, 4  ;;  %s63_s16 = sshll.u32 %s1226_s5, 4  ;;  %s23_s12 = int_to_ptr.vmem [resolvable:$true] %s22_s12  ;;  %s64_s16 = int_to_ptr.hbm [resolvable:$true] %s63_s16 }
   0x9   :  { %28 = dma.hbm_to_vmem [thread:$0]  %s21_s8, 4096, %s23_s12, [#allocation3], %s906_s9, %s906_s9, %s907_s10  }
   0xa   :  { %s909_s17 = smov [#allocation7]   ;;  %s910_s19 = smov [#allocation8]  }
   0xb   :  { %s50_s18 = sshll.u32 %s909_s17, 4  ;;  %s65_s3 = sshll.u32 %s910_s19, 4  ;;  %s51_s18 = int_to_ptr.vmem [resolvable:$true] %s50_s18  ;;  %s66_s3 = int_to_ptr.vmem [resolvable:$true] %s65_s3 }
   0xc   :  { %56 = dma.hbm_to_vmem [thread:$0]  %s49_s1, 2048, %s51_s18, [#allocation6], %s906_s9, %s906_s9, %s907_s10  }
   0xd   :  { %71 = dma.hbm_to_vmem [thread:$0]  %s64_s16, 4096, %s66_s3, [#allocation9], %s906_s9, %s906_s9, %s907_s10  }
   0xe   :  { %897 = dma.done.wait [#allocation3], 4096  }
   0xf   :  { %898 = vsyncadd [#allocation3], 4294963200 }
  0x10   :  { %899 = dma.done.wait [#allocation6], 4096  }
  0x11   :  { %900 = vsyncadd [#allocation6], 4294963200 }
  0x12   :  { %901 = dma.done.wait [#allocation9], 4096  }
  0x13   :  { %902 = vsyncadd [#allocation9], 4294963200  ;;  %v137_v0 = vld [vmem:[#allocation5 + $0x78] sm:$0xff]  ;;  %v136_v1 = vld [vmem:[#allocation5 + $0x70] sm:$0xff]  ;;  %s752_s26 = sshll.u32 %s1228_s7, 4  ;;  %s753_s26 = int_to_ptr.hbm [resolvable:$true] %s752_s26 }
  0x14   :  { %142 = vmatpush.msra.mxu0 %v137_v0  ;;  %v135_v2 = vld [vmem:[#allocation5 + $0x68] sm:$0xff]  ;;  %v134_v3 = vld [vmem:[#allocation5 + $0x60] sm:$0xff]  ;;  %v133_v4 = vld [vmem:[#allocation5 + $0x58] sm:$0xff] }
  0x15   :  { %v132_v5 = vld [vmem:[#allocation5 + $0x50] sm:$0xff]  ;;  %v131_v6 = vld [vmem:[#allocation5 + $0x48] sm:$0xff]  ;;  %v130_v7 = vld [vmem:[#allocation5 + $0x40] sm:$0xff] }
  0x16   :  { %143 = vmatpush.msra.mxu0 %v136_v1  ;;  %v129_v8 = vld [vmem:[#allocation5 + $0x38] sm:$0xff]  ;;  %v128_v9 = vld [vmem:[#allocation5 + $0x30] sm:$0xff]  ;;  %v127_v10 = vld [vmem:[#allocation5 + $0x28] sm:$0xff] }
  0x17   :  { %v126_v11 = vld [vmem:[#allocation5 + $0x20] sm:$0xff]  ;;  %v125_v12 = vld [vmem:[#allocation5 + $0x18] sm:$0xff]  ;;  %v124_v13 = vld [vmem:[#allocation5 + $0x10] sm:$0xff] }
  0x18   :  { %144 = vmatpush.msra.mxu0 %v135_v2  ;;  %v123_v14 = vld [vmem:[#allocation5 + $0x8] sm:$0xff]  ;;  %v122_v15 = vld [vmem:[#allocation5] sm:$0xff]  ;;  %v982_v18 = vld [vmem:[#allocation2 + $0x10] sm:$0xff] }
  0x19   :  { %v976_v16 = vld [vmem:[#allocation2] sm:$0xff]  ;;  %v979_v17 = vld [vmem:[#allocation2 + $0x8] sm:$0xff]  ;;  %v985_v19 = vld [vmem:[#allocation2 + $0x18] sm:$0xff] }
  0x1a   :  { %145 = vmatpush.msra.mxu0 %v134_v3  ;;  %v988_v20 = vld [vmem:[#allocation2 + $0x20] sm:$0xff]  ;;  %v991_v21 = vld [vmem:[#allocation2 + $0x28] sm:$0xff]  ;;  %v994_v22 = vld [vmem:[#allocation2 + $0x30] sm:$0xff] }
  0x1b   :  { %v997_v23 = vld [vmem:[#allocation2 + $0x38] sm:$0xff]  ;;  %v1000_v24 = vld [vmem:[#allocation2 + $0x40] sm:$0xff]  ;;  %v301_v26 = vld [vmem:[#allocation7 + $0x70] sm:$0xff] }
  0x1c   :  { %146 = vmatpush.msra.mxu0 %v133_v4  ;;  %v302_v25 = vld [vmem:[#allocation7 + $0x78] sm:$0xff]  ;;  %v300_v27 = vld [vmem:[#allocation7 + $0x68] sm:$0xff]  ;;  %v299_v29 = vld [vmem:[#allocation7 + $0x60] sm:$0xff] }
  0x1d   :  { %307 = vmatpush.msra.mxu1 %v302_v25  ;;  %v1003_v28 = vld [vmem:[#allocation2 + $0x48] sm:$0xff]  ;;  %v298_v30 = vld [vmem:[#allocation7 + $0x58] sm:$0xff]  ;;  %v297_v31 = vld [vmem:[#allocation7 + $0x50] sm:$0xff] }
  0x1e   :  { %147 = vmatpush.msra.mxu0 %v132_v5  ;;  %v296_v32 = vld [vmem:[#allocation7 + $0x48] sm:$0xff]  ;;  %v1006_v33 = vld [vmem:[#allocation2 + $0x50] sm:$0xff]  ;;  %v295_v34 = vld [vmem:[#allocation7 + $0x40] sm:$0xff] }
  0x1f   :  { %308 = vmatpush.msra.mxu1 %v301_v26  ;;  %v294_v35 = vld [vmem:[#allocation7 + $0x38] sm:$0xff]  ;;  %v293_v36 = vld [vmem:[#allocation7 + $0x30] sm:$0xff]  ;;  %v292_v37 = vld [vmem:[#allocation7 + $0x28] sm:$0xff] }
  0x20   :  { %148 = vmatpush.msra.mxu0 %v131_v6  ;;  %v1009_v38 = vld [vmem:[#allocation2 + $0x58] sm:$0xff]  ;;  %v291_v39 = vld [vmem:[#allocation7 + $0x20] sm:$0xff]  ;;  %v289_v41 = vld [vmem:[#allocation7 + $0x10] sm:$0xff] }
  0x21   :  { %309 = vmatpush.msra.mxu1 %v300_v27  ;;  %v290_v40 = vld [vmem:[#allocation7 + $0x18] sm:$0xff]  ;;  %v1012_v42 = vld [vmem:[#allocation2 + $0x60] sm:$0xff]  ;;  %v288_v43 = vld [vmem:[#allocation7 + $0x8] sm:$0xff] }
  0x22   :  { %149 = vmatpush.msra.mxu0 %v130_v7  ;;  %v287_v44 = vld [vmem:[#allocation7] sm:$0xff]  ;;  %v1015_v45 = vld [vmem:[#allocation2 + $0x68] sm:$0xff]  ;;  %v1018_v46 = vld [vmem:[#allocation2 + $0x70] sm:$0xff] }
  0x23   :  { %310 = vmatpush.msra.mxu1 %v299_v29  ;;  %v1021_v47 = vld [vmem:[#allocation2 + $0x78] sm:$0xff]  ;;  %v1027_v48 = vld [vmem:[%s1223_s2] ss:$0 sm:$0xff]  ;;  %v1033_v54 = vld [vmem:[#allocation2 + $0x88] sm:$0xff] }
  0x24   :  { %150 = vmatpush.msra.mxu0 %v129_v8  ;;  %v1029_v50 = vld [vmem:[#allocation2 + $0x80] sm:$0xff]  ;;  %v1037_v58 = vld [vmem:[#allocation2 + $0x90] sm:$0xff]  ;;  %v1041_v62 = vld [vmem:[#allocation2 + $0x98] sm:$0xff] }
  0x25   :  { %311 = vmatpush.msra.mxu1 %v298_v30  ;;  %v1045_v2 = vld [vmem:[#allocation2 + $0xa0] sm:$0xff]  ;;  %v1049_v6 = vld [vmem:[#allocation2 + $0xa8] sm:$0xff] }
  0x26   :  { %151 = vmatpush.msra.mxu0 %v128_v9  ;;  %v1061_v27 = vld [vmem:[#allocation2 + $0xc0] sm:$0xff] }
  0x27   :  { %312 = vmatpush.msra.mxu1 %v297_v31  ;;  %v467_v31 = vld [vmem:[#allocation8 + $0x78] sm:$0xff] }
  0x28   :  { %152 = vmatpush.msra.mxu0 %v127_v10  ;;  %v1053_v10 = vld [vmem:[#allocation2 + $0xb0] sm:$0xff]  ;;  %488 = vmatpush.msra.mxu2 %v467_v31  ;;  %v1077_v31 = vld [vmem:[#allocation2 + $0xe0] sm:$0xff] }
  0x29   :  { %313 = vmatpush.msra.mxu1 %v296_v32 }
  0x2a   :  { %153 = vmatpush.msra.mxu0 %v126_v11 }
  0x2b   :  { %314 = vmatpush.msra.mxu1 %v295_v34  ;;  %v1065_v34 = vld [vmem:[#allocation2 + $0xc8] sm:$0xff] }
  0x2c   :  { %154 = vmatpush.msra.mxu0 %v125_v12 }
  0x2d   :  { %315 = vmatpush.msra.mxu1 %v294_v35 }
  0x2e   :  { %155 = vmatpush.msra.mxu0 %v124_v13 }
  0x2f   :  { %316 = vmatpush.msra.mxu1 %v293_v36  ;;  %v466_v36 = vld [vmem:[#allocation8 + $0x70] sm:$0xff] }
  0x30   :  { %156 = vmatpush.msra.mxu0 %v123_v14  ;;  %v1057_v14 = vld [vmem:[#allocation2 + $0xb8] sm:$0xff]  ;;  %489 = vmatpush.msra.mxu2 %v466_v36 }
  0x31   :  { %317 = vmatpush.msra.mxu1 %v292_v37  ;;  %v483_v37 = vld [vmem:[#allocation8 + $0xf8] sm:$0xff] }
  0x32   :  { %157 = vmatpush.msra.mxu0 %v122_v15  ;;  %601 = vmatpush.msra.mxu3 %v483_v37  ;;  %v471_v36 = vld [vmem:[#allocation8 + $0x98] sm:$0xff] }
  0x33   :  { %158 = vmatmul.f32.vlgmr.msra.gmra.mxu0 %v976_v16  ;;  %318 = vmatpush.msra.mxu1 %v291_v39 }
  0x35   :  { %319 = vmatpush.msra.mxu1 %v290_v40  ;;  %v465_v40 = vld [vmem:[#allocation8 + $0x68] sm:$0xff] }
  0x36   :  { %490 = vmatpush.msra.mxu2 %v465_v40  ;;  %v470_v40 = vld [vmem:[#allocation8 + $0x90] sm:$0xff] }
  0x37   :  { %320 = vmatpush.msra.mxu1 %v289_v41  ;;  %v482_v41 = vld [vmem:[#allocation8 + $0xf0] sm:$0xff] }
  0x38   :  { %602 = vmatpush.msra.mxu3 %v482_v41  ;;  %v452_v41 = vld [vmem:[#allocation8] sm:$0xff] }
  0x39   :  { %321 = vmatpush.msra.mxu1 %v288_v43  ;;  %v464_v43 = vld [vmem:[#allocation8 + $0x60] sm:$0xff] }
  0x3a   :  { %491 = vmatpush.msra.mxu2 %v464_v43  ;;  %v469_v43 = vld [vmem:[#allocation8 + $0x88] sm:$0xff] }
  0x3b   :  { %161 = vmatmul.f32.gmra.mxu0 %v979_v17  ;;  %322 = vmatpush.msra.mxu1 %v287_v44  ;;  %v481_v44 = vld [vmem:[#allocation8 + $0xe8] sm:$0xff] }
  0x3c   :  { %603 = vmatpush.msra.mxu3 %v481_v44  ;;  %v468_v44 = vld [vmem:[#allocation8 + $0x80] sm:$0xff] }
  0x43   :  { %164 = vmatmul.f32.gmra.mxu0 %v982_v18 }
  0x4b   :  { %167 = vmatmul.f32.gmra.mxu0 %v985_v19 }
  0x53   :  { %170 = vmatmul.f32.gmra.mxu0 %v988_v20 }
  0x5b   :  { %173 = vmatmul.f32.gmra.mxu0 %v991_v21 }
  0x63   :  { %176 = vmatmul.f32.gmra.mxu0 %v994_v22 }
  0x6b   :  { %179 = vmatmul.f32.gmra.mxu0 %v997_v23 }
  0x73   :  { %182 = vmatmul.f32.gmra.mxu0 %v1000_v24 }
  0x7b   :  { %185 = vmatmul.f32.gmra.mxu0 %v1003_v28 }
  0x83   :  { %188 = vmatmul.f32.gmra.mxu0 %v1006_v33 }
  0x8b   :  { %191 = vmatmul.f32.gmra.mxu0 %v1009_v38 }
  0x93   :  { %194 = vmatmul.f32.gmra.mxu0 %v1012_v42 }
  0x9b   :  { %197 = vmatmul.f32.gmra.mxu0 %v1015_v45 }
  0xa3   :  { %200 = vmatmul.f32.gmra.mxu0 %v1018_v46 }
  0xab   :  { %203 = vmatmul.f32.gmra.mxu0 %v1021_v47 }
  0xb0   :  { %v159_v49 = vpop.f32.mrf.mxu0 }
  0xb1   :  { %v160_v51 = vadd.f32 %v1027_v48, %v159_v49  ;;  %v463_v49 = vld [vmem:[#allocation8 + $0x58] sm:$0xff] }
  0xb2   :  { %492 = vmatpush.msra.mxu2 %v463_v49 }
  0xb3   :  { %206 = vmatmul.f32.gmra.mxu0 %v1029_v50  ;;  %v255_v52 = vmax.f32 %v160_v51, 0.0  ;;  %v480_v51 = vld [vmem:[#allocation8 + $0xe0] sm:$0xff] }
  0xb4   :  { %604 = vmatpush.msra.mxu3 %v480_v51  ;;  %v1081_v51 = vld [vmem:[#allocation2 + $0xe8] sm:$0xff] }
  0xb5   :  { %323 = vmatmul.f32.vlgmr.msra.gmra.mxu1 %v255_v52 }
  0xb8   :  { %v162_v53 = vpop.f32.mrf.mxu0 }
  0xb9   :  { %v163_v55 = vadd.f32 %v1027_v48, %v162_v53  ;;  %v1069_v53 = vld [vmem:[#allocation2 + $0xd0] sm:$0xff] }
  0xbb   :  { %209 = vmatmul.f32.gmra.mxu0 %v1033_v54  ;;  %v256_v56 = vmax.f32 %v163_v55, 0.0 }
  0xbd   :  { %326 = vmatmul.f32.gmra.mxu1 %v256_v56  ;;  %v462_v56 = vld [vmem:[#allocation8 + $0x50] sm:$0xff] }
  0xbe   :  { %493 = vmatpush.msra.mxu2 %v462_v56 }
  0xc0   :  { %v165_v57 = vpop.f32.mrf.mxu0 }
  0xc1   :  { %v166_v59 = vadd.f32 %v1027_v48, %v165_v57  ;;  %v479_v57 = vld [vmem:[#allocation8 + $0xd8] sm:$0xff] }
  0xc2   :  { %605 = vmatpush.msra.mxu3 %v479_v57  ;;  %v1086_v57 = vld [vmem:[#allocation2 + $0xf0] sm:$0xff] }
  0xc3   :  { %212 = vmatmul.f32.gmra.mxu0 %v1037_v58  ;;  %v257_v60 = vmax.f32 %v166_v59, 0.0 }
  0xc5   :  { %329 = vmatmul.f32.gmra.mxu1 %v257_v60  ;;  %v461_v60 = vld [vmem:[#allocation8 + $0x48] sm:$0xff] }
  0xc6   :  { %494 = vmatpush.msra.mxu2 %v461_v60 }
  0xc8   :  { %v168_v61 = vpop.f32.mrf.mxu0 }
  0xc9   :  { %v169_v63 = vadd.f32 %v1027_v48, %v168_v61  ;;  %v478_v61 = vld [vmem:[#allocation8 + $0xd0] sm:$0xff] }
  0xca   :  { %606 = vmatpush.msra.mxu3 %v478_v61 }
  0xcb   :  { %215 = vmatmul.f32.gmra.mxu0 %v1041_v62  ;;  %v258_v0 = vmax.f32 %v169_v63, 0.0  ;;  %v460_v63 = vld [vmem:[#allocation8 + $0x40] sm:$0xff] }
  0xcc   :  { %495 = vmatpush.msra.mxu2 %v460_v63  ;;  %v1091_v63 = vld [vmem:[#allocation2 + $0xf8] sm:$0xff] }
  0xcd   :  { %332 = vmatmul.f32.gmra.mxu1 %v258_v0  ;;  %v477_v0 = vld [vmem:[#allocation8 + $0xc8] sm:$0xff] }
  0xce   :  { %607 = vmatpush.msra.mxu3 %v477_v0 }
  0xd0   :  { %v171_v1 = vpop.f32.mrf.mxu0 }
  0xd1   :  { %v172_v3 = vadd.f32 %v1027_v48, %v171_v1  ;;  %v459_v1 = vld [vmem:[#allocation8 + $0x38] sm:$0xff] }
  0xd2   :  { %496 = vmatpush.msra.mxu2 %v459_v1  ;;  %v1099_v1 = vld [vmem:[%s1225_s4] ss:$0 sm:$0xff] }
  0xd3   :  { %218 = vmatmul.f32.gmra.mxu0 %v1045_v2  ;;  %v259_v4 = vmax.f32 %v172_v3, 0.0  ;;  %v476_v3 = vld [vmem:[#allocation8 + $0xc0] sm:$0xff] }
  0xd4   :  { %608 = vmatpush.msra.mxu3 %v476_v3 }
  0xd5   :  { %335 = vmatmul.f32.gmra.mxu1 %v259_v4 }
  0xd8   :  { %v174_v5 = vpop.f32.mrf.mxu0 }
  0xd9   :  { %v175_v7 = vadd.f32 %v1027_v48, %v174_v5  ;;  %v1073_v5 = vld [vmem:[#allocation2 + $0xd8] sm:$0xff] }
  0xdb   :  { %221 = vmatmul.f32.gmra.mxu0 %v1049_v6  ;;  %v260_v8 = vmax.f32 %v175_v7, 0.0 }
  0xdd   :  { %338 = vmatmul.f32.gmra.mxu1 %v260_v8  ;;  %v458_v8 = vld [vmem:[#allocation8 + $0x30] sm:$0xff] }
  0xde   :  { %497 = vmatpush.msra.mxu2 %v458_v8 }
  0xe0   :  { %v177_v9 = vpop.f32.mrf.mxu0 }
  0xe1   :  { %v178_v11 = vadd.f32 %v1027_v48, %v177_v9  ;;  %v475_v9 = vld [vmem:[#allocation8 + $0xb8] sm:$0xff] }
  0xe2   :  { %609 = vmatpush.msra.mxu3 %v475_v9 }
  0xe3   :  { %224 = vmatmul.f32.gmra.mxu0 %v1053_v10  ;;  %v261_v12 = vmax.f32 %v178_v11, 0.0 }
  0xe5   :  { %341 = vmatmul.f32.gmra.mxu1 %v261_v12  ;;  %v457_v12 = vld [vmem:[#allocation8 + $0x28] sm:$0xff] }
  0xe6   :  { %498 = vmatpush.msra.mxu2 %v457_v12 }
  0xe8   :  { %v180_v13 = vpop.f32.mrf.mxu0 }
  0xe9   :  { %v181_v15 = vadd.f32 %v1027_v48, %v180_v13  ;;  %v474_v13 = vld [vmem:[#allocation8 + $0xb0] sm:$0xff] }
  0xea   :  { %610 = vmatpush.msra.mxu3 %v474_v13 }
  0xeb   :  { %227 = vmatmul.f32.gmra.mxu0 %v1057_v14  ;;  %v262_v25 = vmax.f32 %v181_v15, 0.0  ;;  %v456_v15 = vld [vmem:[#allocation8 + $0x20] sm:$0xff] }
  0xec   :  { %499 = vmatpush.msra.mxu2 %v456_v15 }
  0xed   :  { %344 = vmatmul.f32.gmra.mxu1 %v262_v25  ;;  %v473_v25 = vld [vmem:[#allocation8 + $0xa8] sm:$0xff] }
  0xee   :  { %611 = vmatpush.msra.mxu3 %v473_v25 }
  0xf0   :  { %v183_v26 = vpop.f32.mrf.mxu0 }
  0xf1   :  { %v184_v29 = vadd.f32 %v1027_v48, %v183_v26  ;;  %v455_v26 = vld [vmem:[#allocation8 + $0x18] sm:$0xff] }
  0xf2   :  { %500 = vmatpush.msra.mxu2 %v455_v26 }
  0xf3   :  { %v263_v30 = vmax.f32 %v184_v29, 0.0  ;;  %230 = vmatmul.f32.gmra.mxu0 %v1061_v27  ;;  %v472_v29 = vld [vmem:[#allocation8 + $0xa0] sm:$0xff] }
  0xf4   :  { %612 = vmatpush.msra.mxu3 %v472_v29 }
  0xf5   :  { %347 = vmatmul.f32.gmra.mxu1 %v263_v30 }
  0xf6   :  { %613 = vmatpush.msra.mxu3 %v471_v36 }
  0xf8   :  { %v186_v32 = vpop.f32.mrf.mxu0  ;;  %614 = vmatpush.msra.mxu3 %v470_v40 }
  0xf9   :  { %v187_v35 = vadd.f32 %v1027_v48, %v186_v32 }
  0xfa   :  { %615 = vmatpush.msra.mxu3 %v469_v43 }
  0xfb   :  { %v264_v39 = vmax.f32 %v187_v35, 0.0  ;;  %233 = vmatmul.f32.gmra.mxu0 %v1065_v34  ;;  %v454_v35 = vld [vmem:[#allocation8 + $0x10] sm:$0xff] }
  0xfc   :  { %501 = vmatpush.msra.mxu2 %v454_v35  ;;  %616 = vmatpush.msra.mxu3 %v468_v44 }
  0xfd   :  { %350 = vmatmul.f32.gmra.mxu1 %v264_v39  ;;  %v453_v39 = vld [vmem:[#allocation8 + $0x8] sm:$0xff]  ;;  %617 = vmatmul.f32.vlgmr.msra.gmra.mxu3 %v976_v16 }
  0xfe   :  { %502 = vmatpush.msra.mxu2 %v453_v39 }
 0x100   :  { %v189_v52 = vpop.f32.mrf.mxu0  ;;  %503 = vmatpush.msra.mxu2 %v452_v41 }
 0x101   :  { %v190_v55 = vadd.f32 %v1027_v48, %v189_v52 }
 0x103   :  { %v265_v59 = vmax.f32 %v190_v55, 0.0  ;;  %236 = vmatmul.f32.gmra.mxu0 %v1069_v53 }
 0x105   :  { %353 = vmatmul.f32.gmra.mxu1 %v265_v59  ;;  %620 = vmatmul.f32.gmra.mxu3 %v979_v17 }
 0x108   :  { %v192_v4 = vpop.f32.mrf.mxu0 }
 0x109   :  { %v193_v7 = vadd.f32 %v1027_v48, %v192_v4 }
 0x10b   :  { %v266_v11 = vmax.f32 %v193_v7, 0.0  ;;  %239 = vmatmul.f32.gmra.mxu0 %v1073_v5 }
 0x10d   :  { %356 = vmatmul.f32.gmra.mxu1 %v266_v11  ;;  %623 = vmatmul.f32.gmra.mxu3 %v982_v18 }
 0x110   :  { %v195_v30 = vpop.f32.mrf.mxu0 }
 0x111   :  { %v196_v32 = vadd.f32 %v1027_v48, %v195_v30 }
 0x113   :  { %v267_v37 = vmax.f32 %v196_v32, 0.0  ;;  %242 = vmatmul.f32.gmra.mxu0 %v1077_v31 }
 0x115   :  { %359 = vmatmul.f32.gmra.mxu1 %v267_v37  ;;  %626 = vmatmul.f32.gmra.mxu3 %v985_v19 }
 0x118   :  { %v198_v49 = vpop.f32.mrf.mxu0 }
 0x119   :  { %v199_v52 = vadd.f32 %v1027_v48, %v198_v49 }
 0x11b   :  { %v268_v55 = vmax.f32 %v199_v52, 0.0  ;;  %245 = vmatmul.f32.gmra.mxu0 %v1081_v51 }
 0x11d   :  { %362 = vmatmul.f32.gmra.mxu1 %v268_v55  ;;  %629 = vmatmul.f32.gmra.mxu3 %v988_v20 }
 0x120   :  { %v201_v56 = vpop.f32.mrf.mxu0 }
 0x121   :  { %v202_v59 = vadd.f32 %v1027_v48, %v201_v56 }
 0x123   :  { %v269_v60 = vmax.f32 %v202_v59, 0.0  ;;  %248 = vmatmul.f32.gmra.mxu0 %v1086_v57 }
 0x125   :  { %365 = vmatmul.f32.gmra.mxu1 %v269_v60  ;;  %632 = vmatmul.f32.gmra.mxu3 %v991_v21 }
 0x128   :  { %v204_v61 = vpop.f32.mrf.mxu0 }
 0x129   :  { %v205_v16 = vadd.f32 %v1027_v48, %v204_v61 }
 0x12b   :  { %v270_v0 = vmax.f32 %v205_v16, 0.0  ;;  %251 = vmatmul.f32.gmra.mxu0 %v1091_v63 }
 0x12d   :  { %368 = vmatmul.f32.gmra.mxu1 %v270_v0  ;;  %635 = vmatmul.f32.gmra.mxu3 %v994_v22 }
 0x130   :  { %v207_v17 = vpop.f32.mrf.mxu0 }
 0x131   :  { %v208_v3 = vadd.f32 %v1027_v48, %v207_v17 }
 0x132   :  { %v324_v4 = vpop.f32.mrf.mxu1 }
 0x133   :  { %v271_v7 = vmax.f32 %v208_v3, 0.0  ;;  %v325_v8 = vadd.f32 %v1099_v1, %v324_v4 }
 0x135   :  { %371 = vmatmul.f32.gmra.mxu1 %v271_v7  ;;  %v420_v18 = vmax.f32 %v325_v8, 0.0  ;;  %638 = vmatmul.f32.gmra.mxu3 %v997_v23 }
 0x137   :  { %504 = vmatmul.f32.vlgmr.msra.gmra.mxu2 %v420_v18 }
 0x138   :  { %v210_v9 = vpop.f32.mrf.mxu0 }
 0x139   :  { %v211_v11 = vadd.f32 %v1027_v48, %v210_v9 }
 0x13a   :  { %v327_v12 = vpop.f32.mrf.mxu1 }
 0x13b   :  { %v272_v13 = vmax.f32 %v211_v11, 0.0  ;;  %v328_v15 = vadd.f32 %v1099_v1, %v327_v12 }
 0x13d   :  { %374 = vmatmul.f32.gmra.mxu1 %v272_v13  ;;  %v421_v25 = vmax.f32 %v328_v15, 0.0  ;;  %641 = vmatmul.f32.gmra.mxu3 %v1000_v24 }
 0x13f   :  { %507 = vmatmul.f32.gmra.mxu2 %v421_v25 }
 0x140   :  { %v213_v19 = vpop.f32.mrf.mxu0 }
 0x141   :  { %v214_v26 = vadd.f32 %v1027_v48, %v213_v19 }
 0x142   :  { %v330_v29 = vpop.f32.mrf.mxu1 }
 0x143   :  { %v273_v30 = vmax.f32 %v214_v26, 0.0  ;;  %v331_v32 = vadd.f32 %v1099_v1, %v330_v29 }
 0x145   :  { %377 = vmatmul.f32.gmra.mxu1 %v273_v30  ;;  %v422_v35 = vmax.f32 %v331_v32, 0.0  ;;  %644 = vmatmul.f32.gmra.mxu3 %v1003_v28 }
 0x147   :  { %510 = vmatmul.f32.gmra.mxu2 %v422_v35 }
 0x148   :  { %v216_v20 = vpop.f32.mrf.mxu0 }
 0x149   :  { %v217_v36 = vadd.f32 %v1027_v48, %v216_v20 }
 0x14a   :  { %v333_v37 = vpop.f32.mrf.mxu1 }
 0x14b   :  { %v274_v39 = vmax.f32 %v217_v36, 0.0  ;;  %v334_v40 = vadd.f32 %v1099_v1, %v333_v37 }
 0x14d   :  { %380 = vmatmul.f32.gmra.mxu1 %v274_v39  ;;  %v423_v41 = vmax.f32 %v334_v40, 0.0  ;;  %647 = vmatmul.f32.gmra.mxu3 %v1006_v33 }
 0x14f   :  { %513 = vmatmul.f32.gmra.mxu2 %v423_v41 }
 0x150   :  { %v219_v21 = vpop.f32.mrf.mxu0 }
 0x151   :  { %v220_v43 = vadd.f32 %v1027_v48, %v219_v21 }
 0x152   :  { %v336_v44 = vpop.f32.mrf.mxu1 }
 0x153   :  { %v275_v49 = vmax.f32 %v220_v43, 0.0  ;;  %v337_v52 = vadd.f32 %v1099_v1, %v336_v44 }
 0x155   :  { %383 = vmatmul.f32.gmra.mxu1 %v275_v49  ;;  %v424_v55 = vmax.f32 %v337_v52, 0.0  ;;  %650 = vmatmul.f32.gmra.mxu3 %v1009_v38 }
 0x157   :  { %516 = vmatmul.f32.gmra.mxu2 %v424_v55 }
 0x158   :  { %v222_v22 = vpop.f32.mrf.mxu0 }
 0x159   :  { %v223_v56 = vadd.f32 %v1027_v48, %v222_v22 }
 0x15a   :  { %v339_v59 = vpop.f32.mrf.mxu1 }
 0x15b   :  { %v276_v60 = vmax.f32 %v223_v56, 0.0  ;;  %v340_v61 = vadd.f32 %v1099_v1, %v339_v59 }
 0x15d   :  { %386 = vmatmul.f32.gmra.mxu1 %v276_v60  ;;  %v425_v16 = vmax.f32 %v340_v61, 0.0  ;;  %653 = vmatmul.f32.gmra.mxu3 %v1012_v42 }
 0x15f   :  { %519 = vmatmul.f32.gmra.mxu2 %v425_v16 }
 0x160   :  { %v225_v23 = vpop.f32.mrf.mxu0 }
 0x161   :  { %v226_v0 = vadd.f32 %v1027_v48, %v225_v23 }
 0x162   :  { %v342_v17 = vpop.f32.mrf.mxu1 }
 0x163   :  { %v277_v3 = vmax.f32 %v226_v0, 0.0  ;;  %v343_v4 = vadd.f32 %v1099_v1, %v342_v17 }
 0x165   :  { %389 = vmatmul.f32.gmra.mxu1 %v277_v3  ;;  %v426_v7 = vmax.f32 %v343_v4, 0.0  ;;  %656 = vmatmul.f32.gmra.mxu3 %v1015_v45 }
 0x167   :  { %522 = vmatmul.f32.gmra.mxu2 %v426_v7 }
 0x168   :  { %v228_v24 = vpop.f32.mrf.mxu0 }
 0x169   :  { %v229_v8 = vadd.f32 %v1027_v48, %v228_v24 }
 0x16a   :  { %v345_v18 = vpop.f32.mrf.mxu1 }
 0x16b   :  { %v278_v9 = vmax.f32 %v229_v8, 0.0  ;;  %v346_v11 = vadd.f32 %v1099_v1, %v345_v18 }
 0x16d   :  { %392 = vmatmul.f32.gmra.mxu1 %v278_v9  ;;  %v427_v12 = vmax.f32 %v346_v11, 0.0  ;;  %659 = vmatmul.f32.gmra.mxu3 %v1018_v46 }
 0x16f   :  { %525 = vmatmul.f32.gmra.mxu2 %v427_v12 }
 0x170   :  { %v231_v28 = vpop.f32.mrf.mxu0 }
 0x171   :  { %v232_v13 = vadd.f32 %v1027_v48, %v231_v28 }
 0x172   :  { %v348_v15 = vpop.f32.mrf.mxu1 }
 0x173   :  { %v279_v25 = vmax.f32 %v232_v13, 0.0  ;;  %v349_v19 = vadd.f32 %v1099_v1, %v348_v15 }
 0x175   :  { %v428_v26 = vmax.f32 %v349_v19, 0.0  ;;  %395 = vmatmul.f32.gmra.mxu1 %v279_v25  ;;  %662 = vmatmul.f32.gmra.mxu3 %v1021_v47 }
 0x177   :  { %528 = vmatmul.f32.gmra.mxu2 %v428_v26 }
 0x178   :  { %v234_v33 = vpop.f32.mrf.mxu0 }
 0x179   :  { %v235_v29 = vadd.f32 %v1027_v48, %v234_v33 }
 0x17a   :  { %v351_v30 = vpop.f32.mrf.mxu1 }
 0x17b   :  { %v280_v32 = vmax.f32 %v235_v29, 0.0  ;;  %v352_v35 = vadd.f32 %v1099_v1, %v351_v30 }
 0x17d   :  { %v429_v20 = vmax.f32 %v352_v35, 0.0  ;;  %398 = vmatmul.f32.gmra.mxu1 %v280_v32  ;;  %665 = vmatmul.f32.gmra.mxu3 %v1029_v50 }
 0x17f   :  { %531 = vmatmul.f32.gmra.mxu2 %v429_v20 }
 0x180   :  { %v237_v38 = vpop.f32.mrf.mxu0  ;;  %v618_v17 = vpop.f32.mrf.mxu3 }
 0x181   :  { %v238_v36 = vadd.f32 %v1027_v48, %v237_v38 }
 0x182   :  { %v354_v37 = vpop.f32.mrf.mxu1 }
 0x183   :  { %v281_v39 = vmax.f32 %v238_v36, 0.0  ;;  %v355_v40 = vadd.f32 %v1099_v1, %v354_v37 }
 0x185   :  { %v430_v41 = vmax.f32 %v355_v40, 0.0  ;;  %401 = vmatmul.f32.gmra.mxu1 %v281_v39  ;;  %668 = vmatmul.f32.gmra.mxu3 %v1033_v54 }
 0x187   :  { %534 = vmatmul.f32.gmra.mxu2 %v430_v41 }
 0x188   :  { %v240_v42 = vpop.f32.mrf.mxu0  ;;  %v621_v18 = vpop.f32.mrf.mxu3 }
 0x189   :  { %v241_v21 = vadd.f32 %v1027_v48, %v240_v42 }
 0x18a   :  { %v357_v43 = vpop.f32.mrf.mxu1 }
 0x18b   :  { %v282_v44 = vmax.f32 %v241_v21, 0.0  ;;  %v358_v49 = vadd.f32 %v1099_v1, %v357_v43 }
 0x18d   :  { %v431_v52 = vmax.f32 %v358_v49, 0.0  ;;  %404 = vmatmul.f32.gmra.mxu1 %v282_v44  ;;  %671 = vmatmul.f32.gmra.mxu3 %v1037_v58 }
 0x18f   :  { %537 = vmatmul.f32.gmra.mxu2 %v431_v52 }
 0x190   :  { %v243_v45 = vpop.f32.mrf.mxu0  ;;  %v624_v15 = vpop.f32.mrf.mxu3 }
 0x191   :  { %v244_v55 = vadd.f32 %v1027_v48, %v243_v45 }
 0x192   :  { %v360_v22 = vpop.f32.mrf.mxu1 }
 0x193   :  { %v283_v56 = vmax.f32 %v244_v55, 0.0  ;;  %v361_v59 = vadd.f32 %v1099_v1, %v360_v22 }
 0x195   :  { %v432_v60 = vmax.f32 %v361_v59, 0.0  ;;  %407 = vmatmul.f32.gmra.mxu1 %v283_v56  ;;  %674 = vmatmul.f32.gmra.mxu3 %v1041_v62 }
 0x197   :  { %540 = vmatmul.f32.gmra.mxu2 %v432_v60 }
 0x198   :  { %v246_v46 = vpop.f32.mrf.mxu0  ;;  %v627_v26 = vpop.f32.mrf.mxu3 }
 0x199   :  { %v247_v61 = vadd.f32 %v1027_v48, %v246_v46 }
 0x19a   :  { %v363_v16 = vpop.f32.mrf.mxu1 }
 0x19b   :  { %v284_v23 = vmax.f32 %v247_v61, 0.0  ;;  %v364_v0 = vadd.f32 %v1099_v1, %v363_v16 }
 0x19d   :  { %v433_v3 = vmax.f32 %v364_v0, 0.0  ;;  %410 = vmatmul.f32.gmra.mxu1 %v284_v23  ;;  %677 = vmatmul.f32.gmra.mxu3 %v1045_v2 }
 0x19f   :  { %543 = vmatmul.f32.gmra.mxu2 %v433_v3 }
 0x1a0   :  { %v249_v47 = vpop.f32.mrf.mxu0  ;;  %v630_v62 = vpop.f32.mrf.mxu3 }
 0x1a1   :  { %v250_v4 = vadd.f32 %v1027_v48, %v249_v47 }
 0x1a2   :  { %v366_v7 = vpop.f32.mrf.mxu1 }
 0x1a3   :  { %v285_v24 = vmax.f32 %v250_v4, 0.0  ;;  %v367_v8 = vadd.f32 %v1099_v1, %v366_v7 }
 0x1a5   :  { %v434_v9 = vmax.f32 %v367_v8, 0.0  ;;  %413 = vmatmul.f32.gmra.mxu1 %v285_v24  ;;  %680 = vmatmul.f32.gmra.mxu3 %v1049_v6 }
 0x1a7   :  { %546 = vmatmul.f32.gmra.mxu2 %v434_v9 }
 0x1a8   :  { %v252_v50 = vpop.f32.mrf.mxu0  ;;  %v633_v2 = vpop.f32.mrf.mxu3 }
 0x1a9   :  { %v253_v11 = vadd.f32 %v1027_v48, %v252_v50  ;;  %v1154_v48 = vld [vmem:[%s1227_s6] ss:$0 sm:$0xff]  ;;  %s911_s6 = smov [#allocation10]  }
 0x1aa   :  { %v369_v12 = vpop.f32.mrf.mxu1  ;;  %s750_s23 = sshll.u32 %s911_s6, 4  ;;  %s751_s23 = int_to_ptr.vmem [resolvable:$true] %s750_s23 }
 0x1ab   :  { %v286_v28 = vmax.f32 %v253_v11, 0.0  ;;  %v370_v13 = vadd.f32 %v1099_v1, %v369_v12 }
 0x1ad   :  { %v435_v25 = vmax.f32 %v370_v13, 0.0  ;;  %416 = vmatmul.f32.gmra.mxu1 %v286_v28  ;;  %683 = vmatmul.f32.gmra.mxu3 %v1053_v10 }
 0x1af   :  { %549 = vmatmul.f32.gmra.mxu2 %v435_v25 }
 0x1b0   :  { %v636_v6 = vpop.f32.mrf.mxu3 }
 0x1b2   :  { %v372_v54 = vpop.f32.mrf.mxu1 }
 0x1b3   :  { %v373_v19 = vadd.f32 %v1099_v1, %v372_v54 }
 0x1b5   :  { %v436_v33 = vmax.f32 %v373_v19, 0.0  ;;  %686 = vmatmul.f32.gmra.mxu3 %v1057_v14 }
 0x1b7   :  { %552 = vmatmul.f32.gmra.mxu2 %v436_v33 }
 0x1b8   :  { %v639_v10 = vpop.f32.mrf.mxu3 }
 0x1ba   :  { %v375_v58 = vpop.f32.mrf.mxu1  ;;  %v505_v29 = vpop.f32.mrf.mxu2 }
 0x1bb   :  { %v376_v30 = vadd.f32 %v1099_v1, %v375_v58  ;;  %v506_v32 = vadd.f32 %v1154_v48, %v505_v29 }
 0x1bd   :  { %v437_v35 = vmax.f32 %v376_v30, 0.0  ;;  %v619_v20 = vadd.f32 %v618_v17, %v506_v32  ;;  %689 = vmatmul.f32.gmra.mxu3 %v1061_v27 }
 0x1bf   :  { %714 = vst [vmem:[#allocation10] sm:$0xff] %v619_v20  ;;  %555 = vmatmul.f32.gmra.mxu2 %v437_v35 }
 0x1c0   :  { %v642_v14 = vpop.f32.mrf.mxu3 }
 0x1c2   :  { %v378_v38 = vpop.f32.mrf.mxu1  ;;  %v508_v36 = vpop.f32.mrf.mxu2 }
 0x1c3   :  { %v379_v37 = vadd.f32 %v1099_v1, %v378_v38  ;;  %v509_v39 = vadd.f32 %v1154_v48, %v508_v36 }
 0x1c5   :  { %v438_v40 = vmax.f32 %v379_v37, 0.0  ;;  %v622_v41 = vadd.f32 %v621_v18, %v509_v39  ;;  %692 = vmatmul.f32.gmra.mxu3 %v1065_v34 }
 0x1c7   :  { %715 = vst [vmem:[#allocation10 + $0x8] sm:$0xff] %v622_v41  ;;  %558 = vmatmul.f32.gmra.mxu2 %v438_v40 }
 0x1c8   :  { %v645_v27 = vpop.f32.mrf.mxu3 }
 0x1ca   :  { %v381_v42 = vpop.f32.mrf.mxu1  ;;  %v511_v21 = vpop.f32.mrf.mxu2 }
 0x1cb   :  { %v382_v43 = vadd.f32 %v1099_v1, %v381_v42  ;;  %v512_v44 = vadd.f32 %v1154_v48, %v511_v21 }
 0x1cd   :  { %v439_v49 = vmax.f32 %v382_v43, 0.0  ;;  %v625_v52 = vadd.f32 %v624_v15, %v512_v44  ;;  %695 = vmatmul.f32.gmra.mxu3 %v1069_v53 }
 0x1cf   :  { %716 = vst [vmem:[#allocation10 + $0x10] sm:$0xff] %v625_v52  ;;  %561 = vmatmul.f32.gmra.mxu2 %v439_v49 }
 0x1d0   :  { %v648_v34 = vpop.f32.mrf.mxu3 }
 0x1d2   :  { %v384_v45 = vpop.f32.mrf.mxu1  ;;  %v514_v55 = vpop.f32.mrf.mxu2 }
 0x1d3   :  { %v385_v22 = vadd.f32 %v1099_v1, %v384_v45  ;;  %v515_v56 = vadd.f32 %v1154_v48, %v514_v55 }
 0x1d5   :  { %v440_v59 = vmax.f32 %v385_v22, 0.0  ;;  %v628_v60 = vadd.f32 %v627_v26, %v515_v56  ;;  %698 = vmatmul.f32.gmra.mxu3 %v1073_v5 }
 0x1d7   :  { %717 = vst [vmem:[#allocation10 + $0x18] sm:$0xff] %v628_v60  ;;  %564 = vmatmul.f32.gmra.mxu2 %v440_v59 }
 0x1d8   :  { %v651_v53 = vpop.f32.mrf.mxu3 }
 0x1da   :  { %v387_v46 = vpop.f32.mrf.mxu1  ;;  %v517_v61 = vpop.f32.mrf.mxu2 }
 0x1db   :  { %v388_v16 = vadd.f32 %v1099_v1, %v387_v46  ;;  %v518_v23 = vadd.f32 %v1154_v48, %v517_v61 }
 0x1dd   :  { %v441_v0 = vmax.f32 %v388_v16, 0.0  ;;  %v631_v17 = vadd.f32 %v630_v62, %v518_v23  ;;  %701 = vmatmul.f32.gmra.mxu3 %v1077_v31 }
 0x1df   :  { %718 = vst [vmem:[#allocation10 + $0x20] sm:$0xff] %v631_v17  ;;  %567 = vmatmul.f32.gmra.mxu2 %v441_v0 }
 0x1e0   :  { %v654_v5 = vpop.f32.mrf.mxu3 }
 0x1e2   :  { %v390_v3 = vpop.f32.mrf.mxu1  ;;  %v520_v47 = vpop.f32.mrf.mxu2 }
 0x1e3   :  { %v391_v4 = vadd.f32 %v1099_v1, %v390_v3  ;;  %v521_v7 = vadd.f32 %v1154_v48, %v520_v47 }
 0x1e5   :  { %v442_v24 = vmax.f32 %v391_v4, 0.0  ;;  %v634_v8 = vadd.f32 %v633_v2, %v521_v7  ;;  %704 = vmatmul.f32.gmra.mxu3 %v1081_v51 }
 0x1e7   :  { %719 = vst [vmem:[#allocation10 + $0x28] sm:$0xff] %v634_v8  ;;  %570 = vmatmul.f32.gmra.mxu2 %v442_v24 }
 0x1e8   :  { %v657_v31 = vpop.f32.mrf.mxu3 }
 0x1ea   :  { %v393_v18 = vpop.f32.mrf.mxu1  ;;  %v523_v9 = vpop.f32.mrf.mxu2 }
 0x1eb   :  { %v394_v50 = vadd.f32 %v1099_v1, %v393_v18  ;;  %v524_v11 = vadd.f32 %v1154_v48, %v523_v9 }
 0x1ed   :  { %v443_v12 = vmax.f32 %v394_v50, 0.0  ;;  %v637_v28 = vadd.f32 %v636_v6, %v524_v11  ;;  %707 = vmatmul.f32.gmra.mxu3 %v1086_v57 }
 0x1ef   :  { %720 = vst [vmem:[#allocation10 + $0x30] sm:$0xff] %v637_v28  ;;  %573 = vmatmul.f32.gmra.mxu2 %v443_v12 }
 0x1f0   :  { %v660_v51 = vpop.f32.mrf.mxu3 }
 0x1f2   :  { %v396_v13 = vpop.f32.mrf.mxu1  ;;  %v526_v15 = vpop.f32.mrf.mxu2 }
 0x1f3   :  { %v397_v25 = vadd.f32 %v1099_v1, %v396_v13  ;;  %v527_v54 = vadd.f32 %v1154_v48, %v526_v15 }
 0x1f5   :  { %v444_v19 = vmax.f32 %v397_v25, 0.0  ;;  %v640_v26 = vadd.f32 %v639_v10, %v527_v54  ;;  %710 = vmatmul.f32.gmra.mxu3 %v1091_v63 }
 0x1f7   :  { %721 = vst [vmem:[#allocation10 + $0x38] sm:$0xff] %v640_v26  ;;  %576 = vmatmul.f32.gmra.mxu2 %v444_v19 }
 0x1f8   :  { %v663_v57 = vpop.f32.mrf.mxu3 }
 0x1fa   :  { %v399_v33 = vpop.f32.mrf.mxu1  ;;  %v529_v58 = vpop.f32.mrf.mxu2 }
 0x1fb   :  { %v400_v29 = vadd.f32 %v1099_v1, %v399_v33  ;;  %v530_v30 = vadd.f32 %v1154_v48, %v529_v58 }
 0x1fd   :  { %v445_v32 = vmax.f32 %v400_v29, 0.0  ;;  %v643_v62 = vadd.f32 %v642_v14, %v530_v30 }
 0x1ff   :  { %722 = vst [vmem:[#allocation10 + $0x40] sm:$0xff] %v643_v62  ;;  %579 = vmatmul.f32.gmra.mxu2 %v445_v32 }
 0x200   :  { %v666_v60 = vpop.f32.mrf.mxu3 }
 0x202   :  { %v402_v35 = vpop.f32.mrf.mxu1  ;;  %v532_v20 = vpop.f32.mrf.mxu2 }
 0x203   :  { %v403_v38 = vadd.f32 %v1099_v1, %v402_v35  ;;  %v533_v36 = vadd.f32 %v1154_v48, %v532_v20 }
 0x205   :  { %v446_v37 = vmax.f32 %v403_v38, 0.0  ;;  %v646_v39 = vadd.f32 %v645_v27, %v533_v36 }
 0x207   :  { %723 = vst [vmem:[#allocation10 + $0x48] sm:$0xff] %v646_v39  ;;  %582 = vmatmul.f32.gmra.mxu2 %v446_v37 }
 0x208   :  { %v669_v3 = vpop.f32.mrf.mxu3 }
 0x20a   :  { %v405_v2 = vpop.f32.mrf.mxu1  ;;  %v535_v40 = vpop.f32.mrf.mxu2 }
 0x20b   :  { %v406_v41 = vadd.f32 %v1099_v1, %v405_v2  ;;  %v536_v42 = vadd.f32 %v1154_v48, %v535_v40 }
 0x20d   :  { %v447_v21 = vmax.f32 %v406_v41, 0.0  ;;  %v649_v43 = vadd.f32 %v648_v34, %v536_v42 }
 0x20f   :  { %724 = vst [vmem:[#allocation10 + $0x50] sm:$0xff] %v649_v43  ;;  %585 = vmatmul.f32.gmra.mxu2 %v447_v21 }
 0x210   :  { %v672_v18 = vpop.f32.mrf.mxu3 }
 0x212   :  { %v408_v44 = vpop.f32.mrf.mxu1  ;;  %v538_v6 = vpop.f32.mrf.mxu2 }
 0x213   :  { %v409_v49 = vadd.f32 %v1099_v1, %v408_v44  ;;  %v539_v52 = vadd.f32 %v1154_v48, %v538_v6 }
 0x215   :  { %v448_v45 = vmax.f32 %v409_v49, 0.0  ;;  %v652_v55 = vadd.f32 %v651_v53, %v539_v52 }
 0x217   :  { %725 = vst [vmem:[#allocation10 + $0x58] sm:$0xff] %v652_v55  ;;  %588 = vmatmul.f32.gmra.mxu2 %v448_v45 }
 0x218   :  { %v675_v12 = vpop.f32.mrf.mxu3 }
 0x21a   :  { %v411_v22 = vpop.f32.mrf.mxu1  ;;  %v541_v56 = vpop.f32.mrf.mxu2 }
 0x21b   :  { %v412_v10 = vadd.f32 %v1099_v1, %v411_v22  ;;  %v542_v59 = vadd.f32 %v1154_v48, %v541_v56 }
 0x21d   :  { %v449_v46 = vmax.f32 %v412_v10, 0.0  ;;  %v655_v63 = vadd.f32 %v654_v5, %v542_v59 }
 0x21f   :  { %726 = vst [vmem:[#allocation10 + $0x60] sm:$0xff] %v655_v63  ;;  %591 = vmatmul.f32.gmra.mxu2 %v449_v46 }
 0x220   :  { %v678_v25 = vpop.f32.mrf.mxu3 }
 0x222   :  { %v414_v61 = vpop.f32.mrf.mxu1  ;;  %v544_v16 = vpop.f32.mrf.mxu2 }
 0x223   :  { %v415_v23 = vadd.f32 %v1099_v1, %v414_v61  ;;  %v545_v14 = vadd.f32 %v1154_v48, %v544_v16 }
 0x225   :  { %v450_v0 = vmax.f32 %v415_v23, 0.0  ;;  %v658_v17 = vadd.f32 %v657_v31, %v545_v14 }
 0x227   :  { %727 = vst [vmem:[#allocation10 + $0x68] sm:$0xff] %v658_v17  ;;  %594 = vmatmul.f32.gmra.mxu2 %v450_v0 }
 0x228   :  { %v681_v33 = vpop.f32.mrf.mxu3 }
 0x22a   :  { %v417_v47 = vpop.f32.mrf.mxu1  ;;  %v547_v4 = vpop.f32.mrf.mxu2 }
 0x22b   :  { %v418_v7 = vadd.f32 %v1099_v1, %v417_v47  ;;  %v548_v27 = vadd.f32 %v1154_v48, %v547_v4 }
 0x22d   :  { %v451_v24 = vmax.f32 %v418_v7, 0.0  ;;  %v661_v8 = vadd.f32 %v660_v51, %v548_v27 }
 0x22f   :  { %728 = vst [vmem:[#allocation10 + $0x70] sm:$0xff] %v661_v8  ;;  %597 = vmatmul.f32.gmra.mxu2 %v451_v24 }
 0x230   :  { %v684_v5 = vpop.f32.mrf.mxu3 }
 0x232   :  { %v550_v9 = vpop.f32.mrf.mxu2 }
 0x233   :  { %v551_v50 = vadd.f32 %v1154_v48, %v550_v9 }
 0x235   :  { %v664_v11 = vadd.f32 %v663_v57, %v551_v50 }
 0x237   :  { %729 = vst [vmem:[#allocation10 + $0x78] sm:$0xff] %v664_v11 }
 0x238   :  { %v687_v38 = vpop.f32.mrf.mxu3 }
 0x23a   :  { %v553_v34 = vpop.f32.mrf.mxu2 }
 0x23b   :  { %v554_v28 = vadd.f32 %v1154_v48, %v553_v34 }
 0x23d   :  { %v667_v13 = vadd.f32 %v666_v60, %v554_v28 }
 0x23f   :  { %730 = vst [vmem:[#allocation10 + $0x80] sm:$0xff] %v667_v13 }
 0x240   :  { %v690_v2 = vpop.f32.mrf.mxu3 }
 0x242   :  { %v556_v15 = vpop.f32.mrf.mxu2 }
 0x243   :  { %v557_v1 = vadd.f32 %v1154_v48, %v556_v15 }
 0x245   :  { %v670_v54 = vadd.f32 %v669_v3, %v557_v1 }
 0x247   :  { %731 = vst [vmem:[#allocation10 + $0x88] sm:$0xff] %v670_v54 }
 0x248   :  { %v693_v21 = vpop.f32.mrf.mxu3 }
 0x24a   :  { %v559_v53 = vpop.f32.mrf.mxu2 }
 0x24b   :  { %v560_v19 = vadd.f32 %v1154_v48, %v559_v53 }
 0x24d   :  { %v673_v26 = vadd.f32 %v672_v18, %v560_v19 }
 0x24f   :  { %732 = vst [vmem:[#allocation10 + $0x90] sm:$0xff] %v673_v26 }
 0x250   :  { %v696_v49 = vpop.f32.mrf.mxu3 }
 0x252   :  { %v562_v58 = vpop.f32.mrf.mxu2 }
 0x253   :  { %v563_v29 = vadd.f32 %v1154_v48, %v562_v58 }
 0x255   :  { %v676_v30 = vadd.f32 %v675_v12, %v563_v29 }
 0x257   :  { %733 = vst [vmem:[#allocation10 + $0x98] sm:$0xff] %v676_v30 }
 0x258   :  { %v699_v22 = vpop.f32.mrf.mxu3 }
 0x25a   :  { %v565_v32 = vpop.f32.mrf.mxu2 }
 0x25b   :  { %v566_v62 = vadd.f32 %v1154_v48, %v565_v32 }
 0x25d   :  { %v679_v35 = vadd.f32 %v678_v25, %v566_v62 }
 0x25f   :  { %734 = vst [vmem:[#allocation10 + $0xa0] sm:$0xff] %v679_v35 }
 0x260   :  { %v702_v46 = vpop.f32.mrf.mxu3 }
 0x262   :  { %v568_v20 = vpop.f32.mrf.mxu2 }
 0x263   :  { %v569_v36 = vadd.f32 %v1154_v48, %v568_v20 }
 0x265   :  { %v682_v31 = vadd.f32 %v681_v33, %v569_v36 }
 0x267   :  { %735 = vst [vmem:[#allocation10 + $0xa8] sm:$0xff] %v682_v31 }
 0x268   :  { %v705_v14 = vpop.f32.mrf.mxu3 }
 0x26a   :  { %v571_v37 = vpop.f32.mrf.mxu2 }
 0x26b   :  { %v572_v39 = vadd.f32 %v1154_v48, %v571_v37 }
 0x26d   :  { %v685_v40 = vadd.f32 %v684_v5, %v572_v39 }
 0x26f   :  { %736 = vst [vmem:[#allocation10 + $0xb0] sm:$0xff] %v685_v40 }
 0x270   :  { %v708_v47 = vpop.f32.mrf.mxu3 }
 0x272   :  { %v574_v41 = vpop.f32.mrf.mxu2 }
 0x273   :  { %v575_v42 = vadd.f32 %v1154_v48, %v574_v41 }
 0x275   :  { %v688_v51 = vadd.f32 %v687_v38, %v575_v42 }
 0x277   :  { %737 = vst [vmem:[#allocation10 + $0xb8] sm:$0xff] %v688_v51 }
 0x278   :  { %v711_v8 = vpop.f32.mrf.mxu3 }
 0x27a   :  { %v577_v43 = vpop.f32.mrf.mxu2 }
 0x27b   :  { %v578_v44 = vadd.f32 %v1154_v48, %v577_v43 }
 0x27d   :  { %v691_v6 = vadd.f32 %v690_v2, %v578_v44 }
 0x27f   :  { %738 = vst [vmem:[#allocation10 + $0xc0] sm:$0xff] %v691_v6 }
 0x282   :  { %v580_v52 = vpop.f32.mrf.mxu2 }
 0x283   :  { %v581_v57 = vadd.f32 %v1154_v48, %v580_v52 }
 0x285   :  { %v694_v45 = vadd.f32 %v693_v21, %v581_v57 }
 0x287   :  { %739 = vst [vmem:[#allocation10 + $0xc8] sm:$0xff] %v694_v45 }
 0x28a   :  { %v583_v55 = vpop.f32.mrf.mxu2 }
 0x28b   :  { %v584_v56 = vadd.f32 %v1154_v48, %v583_v55 }
 0x28d   :  { %v697_v10 = vadd.f32 %v696_v49, %v584_v56 }
 0x28f   :  { %740 = vst [vmem:[#allocation10 + $0xd0] sm:$0xff] %v697_v10 }
 0x292   :  { %v586_v59 = vpop.f32.mrf.mxu2 }
 0x293   :  { %v587_v60 = vadd.f32 %v1154_v48, %v586_v59 }
 0x295   :  { %v700_v63 = vadd.f32 %v699_v22, %v587_v60 }
 0x297   :  { %741 = vst [vmem:[#allocation10 + $0xd8] sm:$0xff] %v700_v63 }
 0x29a   :  { %v589_v61 = vpop.f32.mrf.mxu2 }
 0x29b   :  { %v590_v16 = vadd.f32 %v1154_v48, %v589_v61 }
 0x29d   :  { %v703_v23 = vadd.f32 %v702_v46, %v590_v16 }
 0x29f   :  { %742 = vst [vmem:[#allocation10 + $0xe0] sm:$0xff] %v703_v23 }
 0x2a2   :  { %v592_v0 = vpop.f32.mrf.mxu2 }
 0x2a3   :  { %v593_v17 = vadd.f32 %v1154_v48, %v592_v0 }
 0x2a5   :  { %v706_v3 = vadd.f32 %v705_v14, %v593_v17 }
 0x2a7   :  { %743 = vst [vmem:[#allocation10 + $0xe8] sm:$0xff] %v706_v3 }
 0x2aa   :  { %v595_v4 = vpop.f32.mrf.mxu2 }
 0x2ab   :  { %v596_v7 = vadd.f32 %v1154_v48, %v595_v4 }
 0x2ad   :  { %v709_v27 = vadd.f32 %v708_v47, %v596_v7 }
 0x2af   :  { %744 = vst [vmem:[#allocation10 + $0xf0] sm:$0xff] %v709_v27 }
 0x2b2   :  { %v598_v24 = vpop.f32.mrf.mxu2 }
 0x2b3   :  { %v599_v18 = vadd.f32 %v1154_v48, %v598_v24 }
 0x2b5   :  { %v712_v9 = vadd.f32 %v711_v8, %v599_v18 }
 0x2b7   :  { %745 = vst [vmem:[#allocation10 + $0xf8] sm:$0xff] %v712_v9 }
 0x2b8   :  { %758 = dma.vmem_to_hbm [thread:$0]  %s751_s23, 4096, %s753_s26, [#allocation4], %s906_s9, %s906_s9, %s907_s10  }
 0x2b9   :  { %903 = dma.done.wait [#allocation4], 4096  }
 0x2ba   :  { %904 = vsyncadd [#allocation4], 4294963200 }
 0x2bb   :  { %763 = vsyncpa [#allocation3], 1 }
 0x2bc   :  { %764 = vsyncpa [#allocation6], 1 }
 0x2bd   :  { %765 = vsyncpa [#allocation9], 1 }
 0x2be   :  { %766 = vsyncpa [#allocation4], 1 }

</bundles_post_ra>
